<compile_context>
chip_gen: v5e
topology: v5e:2x2
jax: 0.10.0
libtpu: 0.0.40
codegen_flags: <defaults>
</compile_context>

<pallas_src>
import functools

import jax
import jax.numpy as jnp
from jax.experimental import pallas as pl
from jax.experimental.pallas import tpu as pltpu  # noqa: F401  (TPU backend import)


def _sigmoid(x):
    # Single-EUP-op sigmoid (tanh form); avoids a possible exp + divide lowering.
    return 0.5 * jnp.tanh(0.5 * x) + 0.5


# ----------------------------------------------------------------------------
# Fused kernel: 2 LSTM layers (wavefront) + FC head, all in VMEM, grid=()
# ----------------------------------------------------------------------------
def _fused_lstm_fc_kernel(x_ref, wih0_ref, bfull_ref, wblk_ref, wfc_ref, bfc_ref,
                          out_ref, *, seq_len, batch, hidden):
    H, B, S = hidden, batch, seq_len
    H2 = 2 * H                      # packed [layer0 | layer1] width

    # ---- prologue: hoisted layer-0 input projection for ALL time steps (one matmul) ----
    # Row block t (rows t*B:(t+1)*B) holds the additive gate term for wave step t in the
    # packed column layout [i0 i1 f0 f1 g0 g1 o0 o1]; the zero-padded extra time step
    # (t == S) reduces to b_full and drives the layer-1-only epilogue wave.
    gx = (jnp.dot(x_ref[...], wih0_ref[...], preferred_element_type=jnp.float32)
          + bfull_ref[...])                                   # ((S+1)*B, 8H)

    w_block = wblk_ref[...]          # (2H, 8H) fused recurrent weights for BOTH layers

    def packed_cell(gates, c_prev):
        # gates: (B, 8H) = [i01 | f01 | g01 | o01], each (B, 2H) packed [layer0 | layer1]
        i = _sigmoid(gates[:, 0 * H2:1 * H2])
        f = _sigmoid(gates[:, 1 * H2:2 * H2])
        g = jnp.tanh(gates[:, 2 * H2:3 * H2])
        o = _sigmoid(gates[:, 3 * H2:4 * H2])
        c_new = f * c_prev + i * g
        h_new = o * jnp.tanh(c_new)
        return h_new, c_new

    # Packed wavefront state after wave step t:  h01 = [h0(t) | h1(t-1)], c01 likewise.
    layer0_cols = jax.lax.broadcasted_iota(jnp.int32, (B, H2), 1) < H

    # wave step 0: h01 == 0, so the recurrent matmul vanishes (gates are just gx[0]);
    # the layer-1 half would be "time -1", so keep it zero.
    h_new, c_new = packed_cell(gx[0:B, :], jnp.zeros((B, H2), jnp.float32))
    h01 = jnp.where(layer0_cols, h_new, 0.0)
    c01 = jnp.where(layer0_cols, c_new, 0.0)

    # wave steps 1..S-1: ONE fused matmul per step (statically unrolled, S is small)
    # computing layer-0 step t and layer-1 step t-1 together.
    for t in range(1, S):
        gates = (jnp.dot(h01, w_block, preferred_element_type=jnp.float32)
                 + gx[t * B:(t + 1) * B, :])
        h01, c01 = packed_cell(gates, c01)

    # epilogue wave step S: only the layer-1 half (its time step S-1) is meaningful.
    gates = (jnp.dot(h01, w_block, preferred_element_type=jnp.float32)
             + gx[S * B:(S + 1) * B, :])
    h_new, _ = packed_cell(gates, c01)
    h1_last = h_new[:, H:H2]                                   # final hidden of layer 1

    # ---- fused FC head on the final hidden state of layer 1 ----------------------------
    out_ref[...] = (jnp.dot(h1_last, wfc_ref[...], preferred_element_type=jnp.float32)
                    + bfc_ref[...]).astype(out_ref.dtype)


def simple_lstm_forward(x, kparams):
    """x: (B, S, input_size) batch-first, like PyTorch nn.LSTM(batch_first=True)."""
    B, S, D = x.shape
    H = kparams["w_block"].shape[0] // 2
    O = kparams["w_fc_t"].shape[1]

    # batch-first -> time-major, flattened: (S*B, D); append one all-zero time step so
    # that gx[S] == b_full inside the kernel (drives the layer-1-only epilogue wave).
    x_tm = jnp.transpose(x, (1, 0, 2)).reshape(S * B, D)
    x_pad = jnp.concatenate([x_tm, jnp.zeros((B, D), x_tm.dtype)], axis=0)

    kernel = functools.partial(_fused_lstm_fc_kernel, seq_len=S, batch=B, hidden=H)

    return pl.pallas_call(
        kernel,
        out_shape=jax.ShapeDtypeStruct((B, O), jnp.float32),
        in_specs=[
            pl.BlockSpec(((S + 1) * B, D), lambda: (0, 0)),    # x (time-major + 1 pad step)
            pl.BlockSpec((D, 8 * H), lambda: (0, 0)),          # W_ih0 -> packed 8H columns
            pl.BlockSpec((1, 8 * H), lambda: (0, 0)),          # packed biases (b0 | b1)
            pl.BlockSpec((2 * H, 8 * H), lambda: (0, 0)),      # [[Whh0, Wih1],[0, Whh1]]
            pl.BlockSpec((H, O), lambda: (0, 0)),              # W_fc^T
            pl.BlockSpec((1, O), lambda: (0, 0)),              # b_fc
        ],
        out_specs=pl.BlockSpec((B, O), lambda: (0, 0)),
    )(x_pad, kparams["wih0_full"], kparams["b_full"], kparams["w_block"],
      kparams["w_fc_t"], kparams["b_fc"])


# ----------------------------------------------------------------------------
# Parameter handling: raw PyTorch-shaped params -> kernel-ready packed layout
# ----------------------------------------------------------------------------
def init_raw_params(key, input_size, hidden_size, output_size):
    """PyTorch-shaped parameters, U(-1/sqrt(H), 1/sqrt(H)) like nn.LSTM defaults."""
    H = hidden_size
    bound = 1.0 / jnp.sqrt(jnp.float32(H))
    ks = jax.random.split(key, 15)

    def u(k, shape):
        return jax.random.uniform(k, shape, jnp.float32, -bound, bound)

    raw = {
        # layer 0
        "w_ih0": u(ks[0], (4 * H, input_size)),
        "w_hh0": u(ks[1], (4 * H, H)),
        "b_ih0": u(ks[2], (4 * H,)),
        "b_hh0": u(ks[3], (4 * H,)),
        # layer 1
        "w_ih1": u(ks[4], (4 * H, H)),
        "w_hh1": u(ks[5], (4 * H, H)),
        "b_ih1": u(ks[6], (4 * H,)),
        "b_hh1": u(ks[7], (4 * H,)),
        # fc (PyTorch Linear: weight (O, H), bias (O,))
        "w_fc": u(ks[8], (output_size, H)),
        "b_fc": u(ks[9], (output_size,)),
    }
    return raw, ks[10]


def pack_params(raw):
    """Host-side packing: gate-interleaved column layout [i0 i1 f0 f1 g0 g1 o0 o1] so the
    kernel never transposes, concatenates, or re-packs anything per step."""
    H = raw["w_hh0"].shape[1]
    D = raw["w_ih0"].shape[1]

    def gates_t(w):  # (4H, K) PyTorch weight -> 4 transposed gate blocks, each (K, H)
        return [w[k * H:(k + 1) * H, :].T for k in range(4)]

    wih0 = gates_t(raw["w_ih0"])     # 4 x (D, H)
    whh0 = gates_t(raw["w_hh0"])     # 4 x (H, H)
    wih1 = gates_t(raw["w_ih1"])     # 4 x (H, H)
    whh1 = gates_t(raw["w_hh1"])     # 4 x (H, H)
    zhh = jnp.zeros((H, H), jnp.float32)
    zdh = jnp.zeros((D, H), jnp.float32)

    # Fused recurrent block matrix (2H, 8H): rows [h0 ; h1].
    top = jnp.concatenate([whh0[0], wih1[0], whh0[1], wih1[1],
                           whh0[2], wih1[2], whh0[3], wih1[3]], axis=1)
    bot = jnp.concatenate([zhh, whh1[0], zhh, whh1[1],
                           zhh, whh1[2], zhh, whh1[3]], axis=1)
    w_block = jnp.concatenate([top, bot], axis=0)                      # (2H, 8H)

    # Input projection straight into the packed 8H layout (layer-1 columns are zero).
    wih0_full = jnp.concatenate([wih0[0], zdh, wih0[1], zdh,
                                 wih0[2], zdh, wih0[3], zdh], axis=1)  # (D, 8H)

    b0 = raw["b_ih0"] + raw["b_hh0"]
    b1 = raw["b_ih1"] + raw["b_hh1"]
    b_full = jnp.concatenate(
        [b0[0:H], b1[0:H], b0[H:2 * H], b1[H:2 * H],
         b0[2 * H:3 * H], b1[2 * H:3 * H], b0[3 * H:4 * H], b1[3 * H:4 * H]])[None, :]

    return {
        "wih0_full": wih0_full,            # (D, 8H)
        "b_full": b_full,                  # (1, 8H)
        "w_block": w_block,                # (2H, 8H)
        "w_fc_t": raw["w_fc"].T,           # (H, O)
        "b_fc": raw["b_fc"][None, :],      # (1, O)
    }


# ----------------------------------------------------------------------------
# Pure-JAX reference (straight PyTorch math, no Pallas) for sanity checking
# ----------------------------------------------------------------------------
def _ref_lstm_layer(x_tm, w_ih, w_hh, b_ih, b_hh):
    S, B, _ = x_tm.shape
    H = w_hh.shape[1]
    h = jnp.zeros((B, H), jnp.float32)
    c = jnp.zeros((B, H), jnp.float32)
    hs = []
    for t in range(S):
        gates = x_tm[t] @ w_ih.T + h @ w_hh.T + b_ih + b_hh
        i = jax.nn.sigmoid(gates[:, 0 * H:1 * H])
        f = jax.nn.sigmoid(gates[:, 1 * H:2 * H])
        g = jnp.tanh(gates[:, 2 * H:3 * H])
        o = jax.nn.sigmoid(gates[:, 3 * H:4 * H])
        c = f * c + i * g
        h = o * jnp.tanh(c)
        hs.append(h)
    return jnp.stack(hs, axis=0)


def _ref_forward(x, raw):
    x_tm = jnp.transpose(x, (1, 0, 2))
    h0 = _ref_lstm_layer(x_tm, raw["w_ih0"], raw["w_hh0"], raw["b_ih0"], raw["b_hh0"])
    h1 = _ref_lstm_layer(h0, raw["w_ih1"], raw["w_hh1"], raw["b_ih1"], raw["b_hh1"])
    return h1[-1] @ raw["w_fc"].T + raw["b_fc"]


if __name__ == "__main__":
    B, S, INPUT, HIDDEN, OUTPUT = 2, 8, 4, 32, 8

    key = jax.random.PRNGKey(0)
    raw, key = init_raw_params(key, INPUT, HIDDEN, OUTPUT)
    kparams = pack_params(raw)
    x = jax.random.normal(key, (B, S, INPUT), jnp.float32)

    out = simple_lstm_forward(x, kparams)
    out = jax.block_until_ready(out)

    ref = _ref_forward(x, raw)
    assert out.shape == (B, OUTPUT)
    assert jnp.allclose(out, ref, atol=1e-4, rtol=1e-4), "mismatch vs JAX reference"

    print("KERNEL_OK")
</pallas_src>

<mosaic_0001>
module attributes {stable_mosaic.version = 11 : i64} {
  func.func @_fused_lstm_fc_kernel(%arg0: memref<18x4xf32, #tpu.memory_space<vmem>>, %arg1: memref<4x256xf32, #tpu.memory_space<vmem>>, %arg2: memref<1x256xf32, #tpu.memory_space<vmem>>, %arg3: memref<64x256xf32, #tpu.memory_space<vmem>>, %arg4: memref<32x8xf32, #tpu.memory_space<vmem>>, %arg5: memref<1x8xf32, #tpu.memory_space<vmem>>, %arg6: memref<2x8xf32, #tpu.memory_space<vmem>>) attributes {dimension_semantics = [], scalar_prefetch = 0 : i64, scratch_operands = 0 : i64, tpu.core_type = #tpu.core_type<tc>} {
    %c0 = arith.constant 0 : index
    %c0_0 = arith.constant 0 : index
    %0 = vector.load %arg0[%c0, %c0_0] : memref<18x4xf32, #tpu.memory_space<vmem>>, vector<18x4xf32>
    %c0_1 = arith.constant 0 : index
    %c0_2 = arith.constant 0 : index
    %1 = vector.load %arg1[%c0_1, %c0_2] : memref<4x256xf32, #tpu.memory_space<vmem>>, vector<4x256xf32>
    %cst = arith.constant dense<0.000000e+00> : vector<18x256xf32>
    %2 = tpu.matmul %0, %1, %cst {dimension_numbers = #tpu.dot_dimension_numbers<[1], [0], [0], [1], [0, 0, 1, 1], [], []>} : vector<18x4xf32>, vector<4x256xf32>, vector<18x256xf32> -> vector<18x256xf32>
    %c0_3 = arith.constant 0 : index
    %c0_4 = arith.constant 0 : index
    %3 = vector.load %arg2[%c0_3, %c0_4] : memref<1x256xf32, #tpu.memory_space<vmem>>, vector<1x256xf32>
    %4 = vector.broadcast %3 : vector<1x256xf32> to vector<18x256xf32>
    %5 = arith.addf %2, %4 : vector<18x256xf32>
    %c0_5 = arith.constant 0 : index
    %c0_6 = arith.constant 0 : index
    %6 = vector.load %arg3[%c0_5, %c0_6] : memref<64x256xf32, #tpu.memory_space<vmem>>, vector<64x256xf32>
    %7 = tpu.iota {dimensions = array<i32: 1>} : vector<2x64xi32>
    %c32_i32 = arith.constant 32 : i32
    %8 = vector.broadcast %c32_i32 : i32 to vector<2x64xi32>
    %9 = arith.cmpi slt, %7, %8 : vector<2x64xi32>
    %10 = vector.extract_strided_slice %5 {offsets = [0, 0], sizes = [2, 256], strides = [1, 1]} : vector<18x256xf32> to vector<2x256xf32>
    %cst_7 = arith.constant 0.000000e+00 : f32
    %11 = vector.broadcast %cst_7 : f32 to vector<2x64xf32>
    %12 = vector.extract_strided_slice %10 {offsets = [0, 0], sizes = [2, 64], strides = [1, 1]} : vector<2x256xf32> to vector<2x64xf32>
    %cst_8 = arith.constant 5.000000e-01 : f32
    %13 = vector.broadcast %cst_8 : f32 to vector<2x64xf32>
    %14 = arith.mulf %13, %12 : vector<2x64xf32>
    %15 = math.tanh %14 : vector<2x64xf32>
    %cst_9 = arith.constant 5.000000e-01 : f32
    %16 = vector.broadcast %cst_9 : f32 to vector<2x64xf32>
    %17 = arith.mulf %16, %15 : vector<2x64xf32>
    %cst_10 = arith.constant 5.000000e-01 : f32
    %18 = vector.broadcast %cst_10 : f32 to vector<2x64xf32>
    %19 = arith.addf %17, %18 : vector<2x64xf32>
    %20 = vector.extract_strided_slice %10 {offsets = [0, 64], sizes = [2, 64], strides = [1, 1]} : vector<2x256xf32> to vector<2x64xf32>
    %cst_11 = arith.constant 5.000000e-01 : f32
    %21 = vector.broadcast %cst_11 : f32 to vector<2x64xf32>
    %22 = arith.mulf %21, %20 : vector<2x64xf32>
    %23 = math.tanh %22 : vector<2x64xf32>
    %cst_12 = arith.constant 5.000000e-01 : f32
    %24 = vector.broadcast %cst_12 : f32 to vector<2x64xf32>
    %25 = arith.mulf %24, %23 : vector<2x64xf32>
    %cst_13 = arith.constant 5.000000e-01 : f32
    %26 = vector.broadcast %cst_13 : f32 to vector<2x64xf32>
    %27 = arith.addf %25, %26 : vector<2x64xf32>
    %28 = vector.extract_strided_slice %10 {offsets = [0, 128], sizes = [2, 64], strides = [1, 1]} : vector<2x256xf32> to vector<2x64xf32>
    %29 = math.tanh %28 : vector<2x64xf32>
    %30 = vector.extract_strided_slice %10 {offsets = [0, 192], sizes = [2, 64], strides = [1, 1]} : vector<2x256xf32> to vector<2x64xf32>
    %cst_14 = arith.constant 5.000000e-01 : f32
    %31 = vector.broadcast %cst_14 : f32 to vector<2x64xf32>
    %32 = arith.mulf %31, %30 : vector<2x64xf32>
    %33 = math.tanh %32 : vector<2x64xf32>
    %cst_15 = arith.constant 5.000000e-01 : f32
    %34 = vector.broadcast %cst_15 : f32 to vector<2x64xf32>
    %35 = arith.mulf %34, %33 : vector<2x64xf32>
    %cst_16 = arith.constant 5.000000e-01 : f32
    %36 = vector.broadcast %cst_16 : f32 to vector<2x64xf32>
    %37 = arith.addf %35, %36 : vector<2x64xf32>
    %38 = arith.mulf %27, %11 : vector<2x64xf32>
    %39 = arith.mulf %19, %29 : vector<2x64xf32>
    %40 = arith.addf %38, %39 : vector<2x64xf32>
    %41 = math.tanh %40 : vector<2x64xf32>
    %42 = arith.mulf %37, %41 : vector<2x64xf32>
    %cst_17 = arith.constant 0.000000e+00 : f32
    %43 = vector.broadcast %cst_17 : f32 to vector<2x64xf32>
    %44 = arith.select %9, %42, %43 : vector<2x64xi1>, vector<2x64xf32>
    %cst_18 = arith.constant 0.000000e+00 : f32
    %45 = vector.broadcast %cst_18 : f32 to vector<2x64xf32>
    %46 = arith.select %9, %40, %45 : vector<2x64xi1>, vector<2x64xf32>
    %cst_19 = arith.constant dense<0.000000e+00> : vector<2x256xf32>
    %47 = tpu.matmul %44, %6, %cst_19 {dimension_numbers = #tpu.dot_dimension_numbers<[1], [0], [0], [1], [0, 0, 1, 1], [], []>} : vector<2x64xf32>, vector<64x256xf32>, vector<2x256xf32> -> vector<2x256xf32>
    %48 = vector.extract_strided_slice %5 {offsets = [2, 0], sizes = [2, 256], strides = [1, 1]} : vector<18x256xf32> to vector<2x256xf32>
    %49 = arith.addf %47, %48 : vector<2x256xf32>
    %50 = vector.extract_strided_slice %49 {offsets = [0, 0], sizes = [2, 64], strides = [1, 1]} : vector<2x256xf32> to vector<2x64xf32>
    %cst_20 = arith.constant 5.000000e-01 : f32
    %51 = vector.broadcast %cst_20 : f32 to vector<2x64xf32>
    %52 = arith.mulf %51, %50 : vector<2x64xf32>
    %53 = math.tanh %52 : vector<2x64xf32>
    %cst_21 = arith.constant 5.000000e-01 : f32
    %54 = vector.broadcast %cst_21 : f32 to vector<2x64xf32>
    %55 = arith.mulf %54, %53 : vector<2x64xf32>
    %cst_22 = arith.constant 5.000000e-01 : f32
    %56 = vector.broadcast %cst_22 : f32 to vector<2x64xf32>
    %57 = arith.addf %55, %56 : vector<2x64xf32>
    %58 = vector.extract_strided_slice %49 {offsets = [0, 64], sizes = [2, 64], strides = [1, 1]} : vector<2x256xf32> to vector<2x64xf32>
    %cst_23 = arith.constant 5.000000e-01 : f32
    %59 = vector.broadcast %cst_23 : f32 to vector<2x64xf32>
    %60 = arith.mulf %59, %58 : vector<2x64xf32>
    %61 = math.tanh %60 : vector<2x64xf32>
    %cst_24 = arith.constant 5.000000e-01 : f32
    %62 = vector.broadcast %cst_24 : f32 to vector<2x64xf32>
    %63 = arith.mulf %62, %61 : vector<2x64xf32>
    %cst_25 = arith.constant 5.000000e-01 : f32
    %64 = vector.broadcast %cst_25 : f32 to vector<2x64xf32>
    %65 = arith.addf %63, %64 : vector<2x64xf32>
    %66 = vector.extract_strided_slice %49 {offsets = [0, 128], sizes = [2, 64], strides = [1, 1]} : vector<2x256xf32> to vector<2x64xf32>
    %67 = math.tanh %66 : vector<2x64xf32>
    %68 = vector.extract_strided_slice %49 {offsets = [0, 192], sizes = [2, 64], strides = [1, 1]} : vector<2x256xf32> to vector<2x64xf32>
    %cst_26 = arith.constant 5.000000e-01 : f32
    %69 = vector.broadcast %cst_26 : f32 to vector<2x64xf32>
    %70 = arith.mulf %69, %68 : vector<2x64xf32>
    %71 = math.tanh %70 : vector<2x64xf32>
    %cst_27 = arith.constant 5.000000e-01 : f32
    %72 = vector.broadcast %cst_27 : f32 to vector<2x64xf32>
    %73 = arith.mulf %72, %71 : vector<2x64xf32>
    %cst_28 = arith.constant 5.000000e-01 : f32
    %74 = vector.broadcast %cst_28 : f32 to vector<2x64xf32>
    %75 = arith.addf %73, %74 : vector<2x64xf32>
    %76 = arith.mulf %65, %46 : vector<2x64xf32>
    %77 = arith.mulf %57, %67 : vector<2x64xf32>
    %78 = arith.addf %76, %77 : vector<2x64xf32>
    %79 = math.tanh %78 : vector<2x64xf32>
    %80 = arith.mulf %75, %79 : vector<2x64xf32>
    %cst_29 = arith.constant dense<0.000000e+00> : vector<2x256xf32>
    %81 = tpu.matmul %80, %6, %cst_29 {dimension_numbers = #tpu.dot_dimension_numbers<[1], [0], [0], [1], [0, 0, 1, 1], [], []>} : vector<2x64xf32>, vector<64x256xf32>, vector<2x256xf32> -> vector<2x256xf32>
    %82 = vector.extract_strided_slice %5 {offsets = [4, 0], sizes = [2, 256], strides = [1, 1]} : vector<18x256xf32> to vector<2x256xf32>
    %83 = arith.addf %81, %82 : vector<2x256xf32>
    %84 = vector.extract_strided_slice %83 {offsets = [0, 0], sizes = [2, 64], strides = [1, 1]} : vector<2x256xf32> to vector<2x64xf32>
    %cst_30 = arith.constant 5.000000e-01 : f32
    %85 = vector.broadcast %cst_30 : f32 to vector<2x64xf32>
    %86 = arith.mulf %85, %84 : vector<2x64xf32>
    %87 = math.tanh %86 : vector<2x64xf32>
    %cst_31 = arith.constant 5.000000e-01 : f32
    %88 = vector.broadcast %cst_31 : f32 to vector<2x64xf32>
    %89 = arith.mulf %88, %87 : vector<2x64xf32>
    %cst_32 = arith.constant 5.000000e-01 : f32
    %90 = vector.broadcast %cst_32 : f32 to vector<2x64xf32>
    %91 = arith.addf %89, %90 : vector<2x64xf32>
    %92 = vector.extract_strided_slice %83 {offsets = [0, 64], sizes = [2, 64], strides = [1, 1]} : vector<2x256xf32> to vector<2x64xf32>
    %cst_33 = arith.constant 5.000000e-01 : f32
    %93 = vector.broadcast %cst_33 : f32 to vector<2x64xf32>
    %94 = arith.mulf %93, %92 : vector<2x64xf32>
    %95 = math.tanh %94 : vector<2x64xf32>
    %cst_34 = arith.constant 5.000000e-01 : f32
    %96 = vector.broadcast %cst_34 : f32 to vector<2x64xf32>
    %97 = arith.mulf %96, %95 : vector<2x64xf32>
    %cst_35 = arith.constant 5.000000e-01 : f32
    %98 = vector.broadcast %cst_35 : f32 to vector<2x64xf32>
    %99 = arith.addf %97, %98 : vector<2x64xf32>
    %100 = vector.extract_strided_slice %83 {offsets = [0, 128], sizes = [2, 64], strides = [1, 1]} : vector<2x256xf32> to vector<2x64xf32>
    %101 = math.tanh %100 : vector<2x64xf32>
    %102 = vector.extract_strided_slice %83 {offsets = [0, 192], sizes = [2, 64], strides = [1, 1]} : vector<2x256xf32> to vector<2x64xf32>
    %cst_36 = arith.constant 5.000000e-01 : f32
    %103 = vector.broadcast %cst_36 : f32 to vector<2x64xf32>
    %104 = arith.mulf %103, %102 : vector<2x64xf32>
    %105 = math.tanh %104 : vector<2x64xf32>
    %cst_37 = arith.constant 5.000000e-01 : f32
    %106 = vector.broadcast %cst_37 : f32 to vector<2x64xf32>
    %107 = arith.mulf %106, %105 : vector<2x64xf32>
    %cst_38 = arith.constant 5.000000e-01 : f32
    %108 = vector.broadcast %cst_38 : f32 to vector<2x64xf32>
    %109 = arith.addf %107, %108 : vector<2x64xf32>
    %110 = arith.mulf %99, %78 : vector<2x64xf32>
    %111 = arith.mulf %91, %101 : vector<2x64xf32>
    %112 = arith.addf %110, %111 : vector<2x64xf32>
    %113 = math.tanh %112 : vector<2x64xf32>
    %114 = arith.mulf %109, %113 : vector<2x64xf32>
    %cst_39 = arith.constant dense<0.000000e+00> : vector<2x256xf32>
    %115 = tpu.matmul %114, %6, %cst_39 {dimension_numbers = #tpu.dot_dimension_numbers<[1], [0], [0], [1], [0, 0, 1, 1], [], []>} : vector<2x64xf32>, vector<64x256xf32>, vector<2x256xf32> -> vector<2x256xf32>
    %116 = vector.extract_strided_slice %5 {offsets = [6, 0], sizes = [2, 256], strides = [1, 1]} : vector<18x256xf32> to vector<2x256xf32>
    %117 = arith.addf %115, %116 : vector<2x256xf32>
    %118 = vector.extract_strided_slice %117 {offsets = [0, 0], sizes = [2, 64], strides = [1, 1]} : vector<2x256xf32> to vector<2x64xf32>
    %cst_40 = arith.constant 5.000000e-01 : f32
    %119 = vector.broadcast %cst_40 : f32 to vector<2x64xf32>
    %120 = arith.mulf %119, %118 : vector<2x64xf32>
    %121 = math.tanh %120 : vector<2x64xf32>
    %cst_41 = arith.constant 5.000000e-01 : f32
    %122 = vector.broadcast %cst_41 : f32 to vector<2x64xf32>
    %123 = arith.mulf %122, %121 : vector<2x64xf32>
    %cst_42 = arith.constant 5.000000e-01 : f32
    %124 = vector.broadcast %cst_42 : f32 to vector<2x64xf32>
    %125 = arith.addf %123, %124 : vector<2x64xf32>
    %126 = vector.extract_strided_slice %117 {offsets = [0, 64], sizes = [2, 64], strides = [1, 1]} : vector<2x256xf32> to vector<2x64xf32>
    %cst_43 = arith.constant 5.000000e-01 : f32
    %127 = vector.broadcast %cst_43 : f32 to vector<2x64xf32>
    %128 = arith.mulf %127, %126 : vector<2x64xf32>
    %129 = math.tanh %128 : vector<2x64xf32>
    %cst_44 = arith.constant 5.000000e-01 : f32
    %130 = vector.broadcast %cst_44 : f32 to vector<2x64xf32>
    %131 = arith.mulf %130, %129 : vector<2x64xf32>
    %cst_45 = arith.constant 5.000000e-01 : f32
    %132 = vector.broadcast %cst_45 : f32 to vector<2x64xf32>
    %133 = arith.addf %131, %132 : vector<2x64xf32>
    %134 = vector.extract_strided_slice %117 {offsets = [0, 128], sizes = [2, 64], strides = [1, 1]} : vector<2x256xf32> to vector<2x64xf32>
    %135 = math.tanh %134 : vector<2x64xf32>
    %136 = vector.extract_strided_slice %117 {offsets = [0, 192], sizes = [2, 64], strides = [1, 1]} : vector<2x256xf32> to vector<2x64xf32>
    %cst_46 = arith.constant 5.000000e-01 : f32
    %137 = vector.broadcast %cst_46 : f32 to vector<2x64xf32>
    %138 = arith.mulf %137, %136 : vector<2x64xf32>
    %139 = math.tanh %138 : vector<2x64xf32>
    %cst_47 = arith.constant 5.000000e-01 : f32
    %140 = vector.broadcast %cst_47 : f32 to vector<2x64xf32>
    %141 = arith.mulf %140, %139 : vector<2x64xf32>
    %cst_48 = arith.constant 5.000000e-01 : f32
    %142 = vector.broadcast %cst_48 : f32 to vector<2x64xf32>
    %143 = arith.addf %141, %142 : vector<2x64xf32>
    %144 = arith.mulf %133, %112 : vector<2x64xf32>
    %145 = arith.mulf %125, %135 : vector<2x64xf32>
    %146 = arith.addf %144, %145 : vector<2x64xf32>
    %147 = math.tanh %146 : vector<2x64xf32>
    %148 = arith.mulf %143, %147 : vector<2x64xf32>
    %cst_49 = arith.constant dense<0.000000e+00> : vector<2x256xf32>
    %149 = tpu.matmul %148, %6, %cst_49 {dimension_numbers = #tpu.dot_dimension_numbers<[1], [0], [0], [1], [0, 0, 1, 1], [], []>} : vector<2x64xf32>, vector<64x256xf32>, vector<2x256xf32> -> vector<2x256xf32>
    %150 = vector.extract_strided_slice %5 {offsets = [8, 0], sizes = [2, 256], strides = [1, 1]} : vector<18x256xf32> to vector<2x256xf32>
    %151 = arith.addf %149, %150 : vector<2x256xf32>
    %152 = vector.extract_strided_slice %151 {offsets = [0, 0], sizes = [2, 64], strides = [1, 1]} : vector<2x256xf32> to vector<2x64xf32>
    %cst_50 = arith.constant 5.000000e-01 : f32
    %153 = vector.broadcast %cst_50 : f32 to vector<2x64xf32>
    %154 = arith.mulf %153, %152 : vector<2x64xf32>
    %155 = math.tanh %154 : vector<2x64xf32>
    %cst_51 = arith.constant 5.000000e-01 : f32
    %156 = vector.broadcast %cst_51 : f32 to vector<2x64xf32>
    %157 = arith.mulf %156, %155 : vector<2x64xf32>
    %cst_52 = arith.constant 5.000000e-01 : f32
    %158 = vector.broadcast %cst_52 : f32 to vector<2x64xf32>
    %159 = arith.addf %157, %158 : vector<2x64xf32>
    %160 = vector.extract_strided_slice %151 {offsets = [0, 64], sizes = [2, 64], strides = [1, 1]} : vector<2x256xf32> to vector<2x64xf32>
    %cst_53 = arith.constant 5.000000e-01 : f32
    %161 = vector.broadcast %cst_53 : f32 to vector<2x64xf32>
    %162 = arith.mulf %161, %160 : vector<2x64xf32>
    %163 = math.tanh %162 : vector<2x64xf32>
    %cst_54 = arith.constant 5.000000e-01 : f32
    %164 = vector.broadcast %cst_54 : f32 to vector<2x64xf32>
    %165 = arith.mulf %164, %163 : vector<2x64xf32>
    %cst_55 = arith.constant 5.000000e-01 : f32
    %166 = vector.broadcast %cst_55 : f32 to vector<2x64xf32>
    %167 = arith.addf %165, %166 : vector<2x64xf32>
    %168 = vector.extract_strided_slice %151 {offsets = [0, 128], sizes = [2, 64], strides = [1, 1]} : vector<2x256xf32> to vector<2x64xf32>
    %169 = math.tanh %168 : vector<2x64xf32>
    %170 = vector.extract_strided_slice %151 {offsets = [0, 192], sizes = [2, 64], strides = [1, 1]} : vector<2x256xf32> to vector<2x64xf32>
    %cst_56 = arith.constant 5.000000e-01 : f32
    %171 = vector.broadcast %cst_56 : f32 to vector<2x64xf32>
    %172 = arith.mulf %171, %170 : vector<2x64xf32>
    %173 = math.tanh %172 : vector<2x64xf32>
    %cst_57 = arith.constant 5.000000e-01 : f32
    %174 = vector.broadcast %cst_57 : f32 to vector<2x64xf32>
    %175 = arith.mulf %174, %173 : vector<2x64xf32>
    %cst_58 = arith.constant 5.000000e-01 : f32
    %176 = vector.broadcast %cst_58 : f32 to vector<2x64xf32>
    %177 = arith.addf %175, %176 : vector<2x64xf32>
    %178 = arith.mulf %167, %146 : vector<2x64xf32>
    %179 = arith.mulf %159, %169 : vector<2x64xf32>
    %180 = arith.addf %178, %179 : vector<2x64xf32>
    %181 = math.tanh %180 : vector<2x64xf32>
    %182 = arith.mulf %177, %181 : vector<2x64xf32>
    %cst_59 = arith.constant dense<0.000000e+00> : vector<2x256xf32>
    %183 = tpu.matmul %182, %6, %cst_59 {dimension_numbers = #tpu.dot_dimension_numbers<[1], [0], [0], [1], [0, 0, 1, 1], [], []>} : vector<2x64xf32>, vector<64x256xf32>, vector<2x256xf32> -> vector<2x256xf32>
    %184 = vector.extract_strided_slice %5 {offsets = [10, 0], sizes = [2, 256], strides = [1, 1]} : vector<18x256xf32> to vector<2x256xf32>
    %185 = arith.addf %183, %184 : vector<2x256xf32>
    %186 = vector.extract_strided_slice %185 {offsets = [0, 0], sizes = [2, 64], strides = [1, 1]} : vector<2x256xf32> to vector<2x64xf32>
    %cst_60 = arith.constant 5.000000e-01 : f32
    %187 = vector.broadcast %cst_60 : f32 to vector<2x64xf32>
    %188 = arith.mulf %187, %186 : vector<2x64xf32>
    %189 = math.tanh %188 : vector<2x64xf32>
    %cst_61 = arith.constant 5.000000e-01 : f32
    %190 = vector.broadcast %cst_61 : f32 to vector<2x64xf32>
    %191 = arith.mulf %190, %189 : vector<2x64xf32>
    %cst_62 = arith.constant 5.000000e-01 : f32
    %192 = vector.broadcast %cst_62 : f32 to vector<2x64xf32>
    %193 = arith.addf %191, %192 : vector<2x64xf32>
    %194 = vector.extract_strided_slice %185 {offsets = [0, 64], sizes = [2, 64], strides = [1, 1]} : vector<2x256xf32> to vector<2x64xf32>
    %cst_63 = arith.constant 5.000000e-01 : f32
    %195 = vector.broadcast %cst_63 : f32 to vector<2x64xf32>
    %196 = arith.mulf %195, %194 : vector<2x64xf32>
    %197 = math.tanh %196 : vector<2x64xf32>
    %cst_64 = arith.constant 5.000000e-01 : f32
    %198 = vector.broadcast %cst_64 : f32 to vector<2x64xf32>
    %199 = arith.mulf %198, %197 : vector<2x64xf32>
    %cst_65 = arith.constant 5.000000e-01 : f32
    %200 = vector.broadcast %cst_65 : f32 to vector<2x64xf32>
    %201 = arith.addf %199, %200 : vector<2x64xf32>
    %202 = vector.extract_strided_slice %185 {offsets = [0, 128], sizes = [2, 64], strides = [1, 1]} : vector<2x256xf32> to vector<2x64xf32>
    %203 = math.tanh %202 : vector<2x64xf32>
    %204 = vector.extract_strided_slice %185 {offsets = [0, 192], sizes = [2, 64], strides = [1, 1]} : vector<2x256xf32> to vector<2x64xf32>
    %cst_66 = arith.constant 5.000000e-01 : f32
    %205 = vector.broadcast %cst_66 : f32 to vector<2x64xf32>
    %206 = arith.mulf %205, %204 : vector<2x64xf32>
    %207 = math.tanh %206 : vector<2x64xf32>
    %cst_67 = arith.constant 5.000000e-01 : f32
    %208 = vector.broadcast %cst_67 : f32 to vector<2x64xf32>
    %209 = arith.mulf %208, %207 : vector<2x64xf32>
    %cst_68 = arith.constant 5.000000e-01 : f32
    %210 = vector.broadcast %cst_68 : f32 to vector<2x64xf32>
    %211 = arith.addf %209, %210 : vector<2x64xf32>
    %212 = arith.mulf %201, %180 : vector<2x64xf32>
    %213 = arith.mulf %193, %203 : vector<2x64xf32>
    %214 = arith.addf %212, %213 : vector<2x64xf32>
    %215 = math.tanh %214 : vector<2x64xf32>
    %216 = arith.mulf %211, %215 : vector<2x64xf32>
    %cst_69 = arith.constant dense<0.000000e+00> : vector<2x256xf32>
    %217 = tpu.matmul %216, %6, %cst_69 {dimension_numbers = #tpu.dot_dimension_numbers<[1], [0], [0], [1], [0, 0, 1, 1], [], []>} : vector<2x64xf32>, vector<64x256xf32>, vector<2x256xf32> -> vector<2x256xf32>
    %218 = vector.extract_strided_slice %5 {offsets = [12, 0], sizes = [2, 256], strides = [1, 1]} : vector<18x256xf32> to vector<2x256xf32>
    %219 = arith.addf %217, %218 : vector<2x256xf32>
    %220 = vector.extract_strided_slice %219 {offsets = [0, 0], sizes = [2, 64], strides = [1, 1]} : vector<2x256xf32> to vector<2x64xf32>
    %cst_70 = arith.constant 5.000000e-01 : f32
    %221 = vector.broadcast %cst_70 : f32 to vector<2x64xf32>
    %222 = arith.mulf %221, %220 : vector<2x64xf32>
    %223 = math.tanh %222 : vector<2x64xf32>
    %cst_71 = arith.constant 5.000000e-01 : f32
    %224 = vector.broadcast %cst_71 : f32 to vector<2x64xf32>
    %225 = arith.mulf %224, %223 : vector<2x64xf32>
    %cst_72 = arith.constant 5.000000e-01 : f32
    %226 = vector.broadcast %cst_72 : f32 to vector<2x64xf32>
    %227 = arith.addf %225, %226 : vector<2x64xf32>
    %228 = vector.extract_strided_slice %219 {offsets = [0, 64], sizes = [2, 64], strides = [1, 1]} : vector<2x256xf32> to vector<2x64xf32>
    %cst_73 = arith.constant 5.000000e-01 : f32
    %229 = vector.broadcast %cst_73 : f32 to vector<2x64xf32>
    %230 = arith.mulf %229, %228 : vector<2x64xf32>
    %231 = math.tanh %230 : vector<2x64xf32>
    %cst_74 = arith.constant 5.000000e-01 : f32
    %232 = vector.broadcast %cst_74 : f32 to vector<2x64xf32>
    %233 = arith.mulf %232, %231 : vector<2x64xf32>
    %cst_75 = arith.constant 5.000000e-01 : f32
    %234 = vector.broadcast %cst_75 : f32 to vector<2x64xf32>
    %235 = arith.addf %233, %234 : vector<2x64xf32>
    %236 = vector.extract_strided_slice %219 {offsets = [0, 128], sizes = [2, 64], strides = [1, 1]} : vector<2x256xf32> to vector<2x64xf32>
    %237 = math.tanh %236 : vector<2x64xf32>
    %238 = vector.extract_strided_slice %219 {offsets = [0, 192], sizes = [2, 64], strides = [1, 1]} : vector<2x256xf32> to vector<2x64xf32>
    %cst_76 = arith.constant 5.000000e-01 : f32
    %239 = vector.broadcast %cst_76 : f32 to vector<2x64xf32>
    %240 = arith.mulf %239, %238 : vector<2x64xf32>
    %241 = math.tanh %240 : vector<2x64xf32>
    %cst_77 = arith.constant 5.000000e-01 : f32
    %242 = vector.broadcast %cst_77 : f32 to vector<2x64xf32>
    %243 = arith.mulf %242, %241 : vector<2x64xf32>
    %cst_78 = arith.constant 5.000000e-01 : f32
    %244 = vector.broadcast %cst_78 : f32 to vector<2x64xf32>
    %245 = arith.addf %243, %244 : vector<2x64xf32>
    %246 = arith.mulf %235, %214 : vector<2x64xf32>
    %247 = arith.mulf %227, %237 : vector<2x64xf32>
    %248 = arith.addf %246, %247 : vector<2x64xf32>
    %249 = math.tanh %248 : vector<2x64xf32>
    %250 = arith.mulf %245, %249 : vector<2x64xf32>
    %cst_79 = arith.constant dense<0.000000e+00> : vector<2x256xf32>
    %251 = tpu.matmul %250, %6, %cst_79 {dimension_numbers = #tpu.dot_dimension_numbers<[1], [0], [0], [1], [0, 0, 1, 1], [], []>} : vector<2x64xf32>, vector<64x256xf32>, vector<2x256xf32> -> vector<2x256xf32>
    %252 = vector.extract_strided_slice %5 {offsets = [14, 0], sizes = [2, 256], strides = [1, 1]} : vector<18x256xf32> to vector<2x256xf32>
    %253 = arith.addf %251, %252 : vector<2x256xf32>
    %254 = vector.extract_strided_slice %253 {offsets = [0, 0], sizes = [2, 64], strides = [1, 1]} : vector<2x256xf32> to vector<2x64xf32>
    %cst_80 = arith.constant 5.000000e-01 : f32
    %255 = vector.broadcast %cst_80 : f32 to vector<2x64xf32>
    %256 = arith.mulf %255, %254 : vector<2x64xf32>
    %257 = math.tanh %256 : vector<2x64xf32>
    %cst_81 = arith.constant 5.000000e-01 : f32
    %258 = vector.broadcast %cst_81 : f32 to vector<2x64xf32>
    %259 = arith.mulf %258, %257 : vector<2x64xf32>
    %cst_82 = arith.constant 5.000000e-01 : f32
    %260 = vector.broadcast %cst_82 : f32 to vector<2x64xf32>
    %261 = arith.addf %259, %260 : vector<2x64xf32>
    %262 = vector.extract_strided_slice %253 {offsets = [0, 64], sizes = [2, 64], strides = [1, 1]} : vector<2x256xf32> to vector<2x64xf32>
    %cst_83 = arith.constant 5.000000e-01 : f32
    %263 = vector.broadcast %cst_83 : f32 to vector<2x64xf32>
    %264 = arith.mulf %263, %262 : vector<2x64xf32>
    %265 = math.tanh %264 : vector<2x64xf32>
    %cst_84 = arith.constant 5.000000e-01 : f32
    %266 = vector.broadcast %cst_84 : f32 to vector<2x64xf32>
    %267 = arith.mulf %266, %265 : vector<2x64xf32>
    %cst_85 = arith.constant 5.000000e-01 : f32
    %268 = vector.broadcast %cst_85 : f32 to vector<2x64xf32>
    %269 = arith.addf %267, %268 : vector<2x64xf32>
    %270 = vector.extract_strided_slice %253 {offsets = [0, 128], sizes = [2, 64], strides = [1, 1]} : vector<2x256xf32> to vector<2x64xf32>
    %271 = math.tanh %270 : vector<2x64xf32>
    %272 = vector.extract_strided_slice %253 {offsets = [0, 192], sizes = [2, 64], strides = [1, 1]} : vector<2x256xf32> to vector<2x64xf32>
    %cst_86 = arith.constant 5.000000e-01 : f32
    %273 = vector.broadcast %cst_86 : f32 to vector<2x64xf32>
    %274 = arith.mulf %273, %272 : vector<2x64xf32>
    %275 = math.tanh %274 : vector<2x64xf32>
    %cst_87 = arith.constant 5.000000e-01 : f32
    %276 = vector.broadcast %cst_87 : f32 to vector<2x64xf32>
    %277 = arith.mulf %276, %275 : vector<2x64xf32>
    %cst_88 = arith.constant 5.000000e-01 : f32
    %278 = vector.broadcast %cst_88 : f32 to vector<2x64xf32>
    %279 = arith.addf %277, %278 : vector<2x64xf32>
    %280 = arith.mulf %269, %248 : vector<2x64xf32>
    %281 = arith.mulf %261, %271 : vector<2x64xf32>
    %282 = arith.addf %280, %281 : vector<2x64xf32>
    %283 = math.tanh %282 : vector<2x64xf32>
    %284 = arith.mulf %279, %283 : vector<2x64xf32>
    %cst_89 = arith.constant dense<0.000000e+00> : vector<2x256xf32>
    %285 = tpu.matmul %284, %6, %cst_89 {dimension_numbers = #tpu.dot_dimension_numbers<[1], [0], [0], [1], [0, 0, 1, 1], [], []>} : vector<2x64xf32>, vector<64x256xf32>, vector<2x256xf32> -> vector<2x256xf32>
    %286 = vector.extract_strided_slice %5 {offsets = [16, 0], sizes = [2, 256], strides = [1, 1]} : vector<18x256xf32> to vector<2x256xf32>
    %287 = arith.addf %285, %286 : vector<2x256xf32>
    %288 = vector.extract_strided_slice %287 {offsets = [0, 0], sizes = [2, 64], strides = [1, 1]} : vector<2x256xf32> to vector<2x64xf32>
    %cst_90 = arith.constant 5.000000e-01 : f32
    %289 = vector.broadcast %cst_90 : f32 to vector<2x64xf32>
    %290 = arith.mulf %289, %288 : vector<2x64xf32>
    %291 = math.tanh %290 : vector<2x64xf32>
    %cst_91 = arith.constant 5.000000e-01 : f32
    %292 = vector.broadcast %cst_91 : f32 to vector<2x64xf32>
    %293 = arith.mulf %292, %291 : vector<2x64xf32>
    %cst_92 = arith.constant 5.000000e-01 : f32
    %294 = vector.broadcast %cst_92 : f32 to vector<2x64xf32>
    %295 = arith.addf %293, %294 : vector<2x64xf32>
    %296 = vector.extract_strided_slice %287 {offsets = [0, 64], sizes = [2, 64], strides = [1, 1]} : vector<2x256xf32> to vector<2x64xf32>
    %cst_93 = arith.constant 5.000000e-01 : f32
    %297 = vector.broadcast %cst_93 : f32 to vector<2x64xf32>
    %298 = arith.mulf %297, %296 : vector<2x64xf32>
    %299 = math.tanh %298 : vector<2x64xf32>
    %cst_94 = arith.constant 5.000000e-01 : f32
    %300 = vector.broadcast %cst_94 : f32 to vector<2x64xf32>
    %301 = arith.mulf %300, %299 : vector<2x64xf32>
    %cst_95 = arith.constant 5.000000e-01 : f32
    %302 = vector.broadcast %cst_95 : f32 to vector<2x64xf32>
    %303 = arith.addf %301, %302 : vector<2x64xf32>
    %304 = vector.extract_strided_slice %287 {offsets = [0, 128], sizes = [2, 64], strides = [1, 1]} : vector<2x256xf32> to vector<2x64xf32>
    %305 = math.tanh %304 : vector<2x64xf32>
    %306 = vector.extract_strided_slice %287 {offsets = [0, 192], sizes = [2, 64], strides = [1, 1]} : vector<2x256xf32> to vector<2x64xf32>
    %cst_96 = arith.constant 5.000000e-01 : f32
    %307 = vector.broadcast %cst_96 : f32 to vector<2x64xf32>
    %308 = arith.mulf %307, %306 : vector<2x64xf32>
    %309 = math.tanh %308 : vector<2x64xf32>
    %cst_97 = arith.constant 5.000000e-01 : f32
    %310 = vector.broadcast %cst_97 : f32 to vector<2x64xf32>
    %311 = arith.mulf %310, %309 : vector<2x64xf32>
    %cst_98 = arith.constant 5.000000e-01 : f32
    %312 = vector.broadcast %cst_98 : f32 to vector<2x64xf32>
    %313 = arith.addf %311, %312 : vector<2x64xf32>
    %314 = arith.mulf %303, %282 : vector<2x64xf32>
    %315 = arith.mulf %295, %305 : vector<2x64xf32>
    %316 = arith.addf %314, %315 : vector<2x64xf32>
    %317 = math.tanh %316 : vector<2x64xf32>
    %318 = arith.mulf %313, %317 : vector<2x64xf32>
    %319 = vector.extract_strided_slice %318 {offsets = [0, 32], sizes = [2, 32], strides = [1, 1]} : vector<2x64xf32> to vector<2x32xf32>
    %c0_99 = arith.constant 0 : index
    %c0_100 = arith.constant 0 : index
    %320 = vector.load %arg4[%c0_99, %c0_100] : memref<32x8xf32, #tpu.memory_space<vmem>>, vector<32x8xf32>
    %cst_101 = arith.constant dense<0.000000e+00> : vector<2x8xf32>
    %321 = tpu.matmul %319, %320, %cst_101 {dimension_numbers = #tpu.dot_dimension_numbers<[1], [0], [0], [1], [0, 0, 1, 1], [], []>} : vector<2x32xf32>, vector<32x8xf32>, vector<2x8xf32> -> vector<2x8xf32>
    %c0_102 = arith.constant 0 : index
    %c0_103 = arith.constant 0 : index
    %322 = vector.load %arg5[%c0_102, %c0_103] : memref<1x8xf32, #tpu.memory_space<vmem>>, vector<1x8xf32>
    %323 = vector.broadcast %322 : vector<1x8xf32> to vector<2x8xf32>
    %324 = arith.addf %321, %323 : vector<2x8xf32>
    %c0_104 = arith.constant 0 : index
    %c0_105 = arith.constant 0 : index
    %325 = vector.load %arg6[%c0_104, %c0_105] : memref<2x8xf32, #tpu.memory_space<vmem>>, vector<2x8xf32>
    tpu.vector_store %arg6[%c0_104, %c0_105], %324 {strides = array<i32>} : memref<2x8xf32, #tpu.memory_space<vmem>>, vector<2x8xf32>,
    return
  }
}

</mosaic_0001>

<bundles_post_ra>
// kernel: tpu_custom_call.1
= control target key start
LH: loop header
LB: loop body
LE: loop exit
PB: predicated region body
PF: predicated region fallthrough
CT: control target
= control target key end

     0   :  { %11 = vsyncpa [#allocation3], 0  ;;  %s1242_s0 = inlined_call_operand.vmem [shape: f32[18,4], index: 0, kind: input, shape index: {}]   ;;  %s1243_s1 = inlined_call_operand.vmem [shape: f32[4,256], index: 1, kind: input, shape index: {}]   ;;  %s1244_s2 = inlined_call_operand.vmem [shape: f32[1,256], index: 2, kind: input, shape index: {}]   ;;  %s1245_s3 = inlined_call_operand.hbm [shape: f32[64,256], index: 3, kind: input, shape index: {}]   ;;  %s1246_s4 = inlined_call_operand.vmem [shape: f32[32,8], index: 4, kind: input, shape index: {}]   ;;  %s1247_s5 = inlined_call_operand.vmem [shape: f32[1,8], index: 5, kind: input, shape index: {}]   ;;  %s1248_s6 = inlined_call_operand.hbm [shape: f32[2,8], index: 6, kind: output, shape index: {}]  }
   0x1   :  { %12 = vsyncpa [#allocation4], 0  ;;  %s23_s23 = sshll.u32 %s1245_s3, 4  ;;  %s913_s24 = smov [#allocation2]   ;;  %s24_s23 = int_to_ptr.hbm [resolvable:$true] %s23_s23 }
   0x2   :  { %s25_s25 = sshll.u32 %s913_s24, 4  ;;  %s914_s26 = smov 256   ;;  %s26_s25 = int_to_ptr.vmem [resolvable:$true] %s25_s25 }
   0x3   :  { %s915_s27 = smov 16  }
   0x4   :  { %31 = dma.hbm_to_vmem [thread:$0]  %s24_s23, 2048, %s26_s25, [#allocation3], %s914_s26, %s914_s26, %s915_s27  }
   0x5   :  { %909 = dma.done.wait [#allocation3], 2048  }
   0x6   :  { %910 = vsyncadd [#allocation3], 4294965248  ;;  %v43_v0 = vld [vmem:[%s1243_s1] sm:$0xff]  ;;  %vm64_vm0 = vcmask 1043456   ;;  %vm54_vm1 = vcmask 31744   ;;  %s916_s1 = smov 64   ;;  %v137_v43 = vlaneseq }
   0x7   :  { %51 = vst [vmem:[#allocation1] ss:$2 sm:$0xff] %v43_v0  ;;  %v40_v1 = vld [vmem:[%s1242_s0] sm:$0xff]  ;;  %v981_v17 = vld [vmem:[#allocation2 + $0x70] sm:$0xff]  ;;  %v985_v19 = vld [vmem:[#allocation2 + $0x60] sm:$0xff]  ;;  %vm174_vm3 = vcmask 523264  }
   0x8   :  { %v44_v4 = vld [vmem:[%s1244_s2] sm:$0x3]  ;;  %186 = vmatpush.msra.mxu2 %v981_v17  ;;  %v989_v20 = vld [vmem:[#allocation2 + $0x68] sm:$0xff]  ;;  %v991_v21 = vld [vmem:[#allocation2 + $0x50] sm:$0xff]  ;;  %v138_v44 = vand.u32 127, %v137_v43  ;;  %s917_s19 = smov 32  }
   0x9   :  { %v968_v5 = vperm.slane %v44_v4, 0  ;;  %v970_v6 = vperm.slane %v44_v4, 1  ;;  %v983_v18 = vld [vmem:[#allocation2 + $0x78] sm:$0xff]  ;;  %v1008_v32 = vld [vmem:[#allocation2 + $0x40] sm:$0xff]  ;;  %v1010_v33 = vld [vmem:[#allocation2 + $0x48] sm:$0xff]  ;;  %vm714_vm4 = vcmask 261120  }
   0xa   :  { %v993_v22 = vld [vmem:[#allocation2 + $0x58] sm:$0xff]  ;;  %187 = vmatpush.msra.mxu2 %v985_v19  ;;  %v1017_v34 = vld [vmem:[%s1242_s0 + $0x10] sm:$0x3]  ;;  %v1019_v35 = vld [vmem:[#allocation2 + $0x30] sm:$0xff]  ;;  %vm139_vm2 = vcmp.lt.s32.totalorder %v138_v44, 32  ;;  %s918_s21 = smov [#allocation5]  }
   0xb   :  { %v1021_v36 = vld [vmem:[#allocation2 + $0x38] sm:$0xff]  ;;  %v1025_v37 = vld [vmem:[#allocation2 + $0x20] sm:$0xff]  ;;  %v1027_v38 = vld [vmem:[#allocation2 + $0x28] sm:$0xff]  ;;  %s744_s22 = sshll.u32 %s918_s21, 4  ;;  %s746_s25 = sshll.u32 %s1248_s6, 4  ;;  %vm737_vm5 = vcmask 58368   ;;  %s745_s22 = int_to_ptr.vmem [resolvable:$true] %s744_s22  ;;  %s747_s25 = int_to_ptr.hbm [resolvable:$true] %s746_s25 }
   0xc   :  { %188 = vmatpush.msra.mxu2 %v991_v21  ;;  %v1032_v39 = vld [vmem:[#allocation2 + $0x10] sm:$0xff]  ;;  %v1034_v40 = vld [vmem:[#allocation2 + $0x18] sm:$0xff]  ;;  %v1044_v41 = vld [vmem:[#allocation2] sm:$0xff] }
   0xd   :  { %v1046_v42 = vld [vmem:[#allocation2 + $0x8] sm:$0xff]  ;;  %v41_v62 = vld [vmem:[%s1242_s0 + $0x8] sm:$0xff] }
   0xe   :  { %v52_v2 = vld.sshfl [vmem:[#allocation1] sm:$0xff pattern:$0x75316420]  ;;  %v53_v3 = vld.sshfl [vmem:[#allocation1 + $0x8] sm:$0xff pattern:$0x75316420]  ;;  %189 = vmatpush.msra.mxu2 %v1008_v32 }
   0xf   :  { %756 = vmatpush.msk.msra.mxu0 %vm64_vm0, %v52_v2  ;;  %760 = vmatpush.msk.msra.mxu1 %vm64_vm0, %v53_v3 }
  0x10   :  { %757 = vmatmul.msk.f32.vlgmr.msra.gmra.mxu0 %vm54_vm1, %v40_v1  ;;  %761 = vmatmul.msk.f32.vlgmr.msra.gmra.mxu1 %vm54_vm1, %v40_v1 }
  0x11   :  { %781 = vmatpush.msk.msra.mxu3 %vm64_vm0, %v52_v2  ;;  %277 = vmatpush.msrb.mxu1 %v983_v18 }
  0x12   :  { %257 = vmatpush.msrb.mxu0 %v981_v17  ;;  %759 = vmatmul.msk.f32.vlgmr.msra.gmra.mxu3 %vm54_vm1, %v1017_v34 }
  0x13   :  { %206 = vmatpush.msrb.mxu3 %v983_v18  ;;  %278 = vmatpush.msrb.mxu1 %v989_v20 }
  0x14   :  { %258 = vmatpush.msrb.mxu0 %v985_v19  ;;  %190 = vmatpush.msra.mxu2 %v1019_v35 }
  0x15   :  { %207 = vmatpush.msrb.mxu3 %v989_v20  ;;  %279 = vmatpush.msrb.mxu1 %v993_v22 }
  0x16   :  { %259 = vmatpush.msrb.mxu0 %v991_v21  ;;  %191 = vmatpush.msra.mxu2 %v1025_v37 }
  0x17   :  { %208 = vmatpush.msrb.mxu3 %v993_v22  ;;  %280 = vmatpush.msrb.mxu1 %v1010_v33 }
  0x18   :  { %260 = vmatpush.msrb.mxu0 %v1008_v32  ;;  %192 = vmatpush.msra.mxu2 %v1032_v39 }
  0x19   :  { %209 = vmatpush.msrb.mxu3 %v1010_v33  ;;  %281 = vmatpush.msrb.mxu1 %v1021_v36 }
  0x1a   :  { %261 = vmatpush.msrb.mxu0 %v1019_v35  ;;  %193 = vmatpush.msra.mxu2 %v1044_v41 }
  0x1b   :  { %210 = vmatpush.msrb.mxu3 %v1021_v36  ;;  %282 = vmatpush.msrb.mxu1 %v1027_v38 }
  0x1c   :  { %262 = vmatpush.msrb.mxu0 %v1025_v37  ;;  %324 = vmatpush.msrb.mxu2 %v981_v17 }
  0x1d   :  { %211 = vmatpush.msrb.mxu3 %v1027_v38  ;;  %283 = vmatpush.msrb.mxu1 %v1034_v40 }
  0x1e   :  { %263 = vmatpush.msrb.mxu0 %v1032_v39  ;;  %325 = vmatpush.msrb.mxu2 %v985_v19 }
  0x1f   :  { %212 = vmatpush.msrb.mxu3 %v1034_v40  ;;  %284 = vmatpush.msrb.mxu1 %v1046_v42 }
  0x20   :  { %264 = vmatpush.msrb.mxu0 %v1044_v41  ;;  %326 = vmatpush.msrb.mxu2 %v991_v21 }
  0x21   :  { %213 = vmatpush.msrb.mxu3 %v1046_v42  ;;  %407 = vmatpush.msra.mxu1 %v983_v18 }
  0x22   :  { %387 = vmatpush.msra.mxu0 %v981_v17  ;;  %327 = vmatpush.msrb.mxu2 %v1008_v32 }
  0x23   :  { %344 = vmatpush.msra.mxu3 %v983_v18  ;;  %408 = vmatpush.msra.mxu1 %v989_v20 }
  0x24   :  { %388 = vmatpush.msra.mxu0 %v985_v19  ;;  %328 = vmatpush.msrb.mxu2 %v1019_v35 }
  0x25   :  { %345 = vmatpush.msra.mxu3 %v989_v20  ;;  %409 = vmatpush.msra.mxu1 %v993_v22 }
  0x26   :  { %389 = vmatpush.msra.mxu0 %v991_v21  ;;  %329 = vmatpush.msrb.mxu2 %v1025_v37 }
  0x27   :  { %346 = vmatpush.msra.mxu3 %v993_v22  ;;  %410 = vmatpush.msra.mxu1 %v1010_v33 }
  0x28   :  { %390 = vmatpush.msra.mxu0 %v1008_v32  ;;  %330 = vmatpush.msrb.mxu2 %v1032_v39 }
  0x29   :  { %347 = vmatpush.msra.mxu3 %v1010_v33  ;;  %411 = vmatpush.msra.mxu1 %v1021_v36 }
  0x2a   :  { %391 = vmatpush.msra.mxu0 %v1019_v35  ;;  %331 = vmatpush.msrb.mxu2 %v1044_v41 }
  0x2b   :  { %348 = vmatpush.msra.mxu3 %v1021_v36  ;;  %412 = vmatpush.msra.mxu1 %v1027_v38 }
  0x2c   :  { %392 = vmatpush.msra.mxu0 %v1025_v37  ;;  %762 = vmatmul.msk.f32.gmra.mxu1 %vm54_vm1, %v41_v62 }
  0x2d   :  { %349 = vmatpush.msra.mxu3 %v1027_v38  ;;  %413 = vmatpush.msra.mxu1 %v1034_v40 }
  0x2e   :  { %393 = vmatpush.msra.mxu0 %v1032_v39 }
  0x2f   :  { %350 = vmatpush.msra.mxu3 %v1034_v40  ;;  %414 = vmatpush.msra.mxu1 %v1046_v42 }
  0x30   :  { %394 = vmatpush.msra.mxu0 %v1044_v41 }
  0x31   :  { %351 = vmatpush.msra.mxu3 %v1046_v42  ;;  %758 = vmatmul.msk.f32.gmra.mxu0 %vm54_vm1, %v41_v62 }
  0x34   :  { %763 = vmatmul.msk.f32.gmra.mxu1 %vm54_vm1, %v1017_v34 }
  0x8d   :  { %v86_v7 = vpop.f32.mrf.mxu0  ;;  %v112_v8 = vpop.f32.mrf.mxu1 }
  0x8e   :  { %v973_v9 = vadd.f32 %v86_v7, %v968_v5  ;;  %v976_v10 = vadd.f32 %v112_v8, %v970_v6 }
  0x90   :  { %v140_v11 = vmul.f32 0.5, %v973_v9  ;;  %v145_v23 = vmul.f32 0.5, %v976_v10  ;;  %v170_v50 = vrot.slane %v973_v9, 2  ;;  %v171_v55 = vrot.slane %v976_v10, 2 }
  0x92   :  { %789 = vtanh.f32 %v140_v11 }
  0x93   :  { %791 = vtanh.f32 %v976_v10 }
  0x94   :  { %793 = vtanh.f32 %v145_v23  ;;  %v243_v23 = vrot.slane %v973_v9, 4 }
  0x95   :  { %v1106_v49 = vpop.f32.mrf.mxu3 }
  0x98   :  { %v790_v12 = vpop.eup %789 }
  0x99   :  { %v142_v13 = vmul.f32 0.5, %v790_v12  ;;  %v792_v14 = vpop.eup %791 }
  0x9a   :  { %v794_v26 = vpop.eup %793 }
  0x9b   :  { %v143_v15 = vadd.f32 0.5, %v142_v13  ;;  %v147_v28 = vmul.f32 0.5, %v794_v26 }
  0x9d   :  { %v150_v16 = vmul.f32 %v792_v14, %v143_v15  ;;  %v149_v24 = vmul.f32 0.0, %v143_v15  ;;  %v148_v29 = vadd.f32 0.5, %v147_v28  ;;  %v244_v28 = vrot.slane %v976_v10, 4 }
  0x9f   :  { %152 = vrot.lane.b32.xlu0 %v150_v16, %s916_s1 }
  0xa9   :  { %v1137_v14 = vpop.f32.mrf.mxu1 }
  0xae   :  { %v1139_v15 = vpop.f32.mrf.mxu0 }
  0xb1   :  { %v1141_v16 = vpop.f32.mrf.mxu1 }
 0x111   :  { %v153_v25 = vpop.permute.xlu0 %152 }
 0x112   :  { %v155_v27 = vadd.f32 %v153_v25, %v149_v24 }
 0x114   :  { %795 = vtanh.f32 %v155_v27  ;;  %164 = vrot.lane.b32.xlu1 %v155_v27, %s916_s1 }
 0x11a   :  { %v796_v30 = vpop.eup %795 }
 0x11b   :  { %v157_v31 = vmul.f32 %v796_v30, %v148_v29 }
 0x11d   :  { %159 = vrot.lane.b32.xlu0 %v157_v31, %s916_s1 }
 0x186   :  { %v165_v45 = vpop.permute.xlu1 %164 }
 0x187   :  { %v167_v46 = vsel %vm139_vm2, %v165_v45, 0.0 }
 0x188   :  { %228 = vrot.lane.b32.xlu1 %v167_v46, %s916_s1 }
 0x18f   :  { %v160_v47 = vpop.permute.xlu0 %159 }
 0x190   :  { %v162_v48 = vsel %vm139_vm2, %v160_v47, 0.0 }
 0x191   :  { %764 = vmatmul.msk.f32.vlgmr.msra.gmra.mxu2 %vm174_vm3, %v162_v48  ;;  %765 = vmatmul.msk.f32.vlgmr.msrb.gmra.mxu3 %vm174_vm3, %v162_v48 }
 0x192   :  { %456 = vmatpush.msra.mxu2 %v981_v17  ;;  %476 = vmatpush.msrb.mxu3 %v983_v18 }
 0x194   :  { %457 = vmatpush.msra.mxu2 %v985_v19  ;;  %477 = vmatpush.msrb.mxu3 %v989_v20 }
 0x196   :  { %458 = vmatpush.msra.mxu2 %v991_v21  ;;  %478 = vmatpush.msrb.mxu3 %v993_v22 }
 0x198   :  { %459 = vmatpush.msra.mxu2 %v1008_v32  ;;  %479 = vmatpush.msrb.mxu3 %v1010_v33 }
 0x19a   :  { %460 = vmatpush.msra.mxu2 %v1019_v35  ;;  %480 = vmatpush.msrb.mxu3 %v1021_v36 }
 0x19c   :  { %461 = vmatpush.msra.mxu2 %v1025_v37  ;;  %481 = vmatpush.msrb.mxu3 %v1027_v38 }
 0x19e   :  { %462 = vmatpush.msra.mxu2 %v1032_v39  ;;  %482 = vmatpush.msrb.mxu3 %v1034_v40 }
 0x1a0   :  { %463 = vmatpush.msra.mxu2 %v1044_v41  ;;  %483 = vmatpush.msrb.mxu3 %v1046_v42 }
 0x1fa   :  { %v229_v0 = vpop.permute.xlu1 %228 }
 0x214   :  { %v195_v51 = vpop.f32.mrf.mxu2  ;;  %v215_v53 = vpop.f32.mrf.mxu3 }
 0x215   :  { %v196_v52 = vadd.f32 %v195_v51, %v170_v50  ;;  %v216_v56 = vadd.f32 %v215_v53, %v171_v55 }
 0x217   :  { %v218_v54 = vmul.f32 0.5, %v196_v52  ;;  %v223_v63 = vmul.f32 0.5, %v216_v56 }
 0x219   :  { %797 = vtanh.f32 %v218_v54 }
 0x21a   :  { %799 = vtanh.f32 %v216_v56  ;;  %v310_v56 = vrot.slane %v973_v9, 6 }
 0x21b   :  { %801 = vtanh.f32 %v223_v63 }
 0x21f   :  { %v798_v57 = vpop.eup %797 }
 0x220   :  { %v220_v58 = vmul.f32 0.5, %v798_v57  ;;  %v800_v60 = vpop.eup %799 }
 0x221   :  { %v802_v3 = vpop.eup %801 }
 0x222   :  { %v221_v59 = vadd.f32 0.5, %v220_v58  ;;  %v225_v7 = vmul.f32 0.5, %v802_v3 }
 0x224   :  { %v232_v61 = vmul.f32 %v800_v60, %v221_v59  ;;  %v231_v1 = vmul.f32 %v229_v0, %v221_v59  ;;  %v226_v8 = vadd.f32 0.5, %v225_v7 }
 0x226   :  { %234 = vrot.lane.b32.xlu2 %v232_v61, %s916_s1  ;;  %v311_v61 = vrot.slane %v976_v10, 6 }
 0x280   :  { %v235_v2 = vpop.permute.xlu2 %234 }
 0x281   :  { %v237_v4 = vadd.f32 %v235_v2, %v231_v1 }
 0x283   :  { %803 = vtanh.f32 %v237_v4 }
 0x289   :  { %v804_v11 = vpop.eup %803 }
 0x28a   :  { %v239_v12 = vmul.f32 %v804_v11, %v226_v8 }
 0x28c   :  { %241 = vrot.lane.b32.xlu2 %v239_v12, %s916_s1 }
 0x2e6   :  { %v242_v13 = vpop.permute.xlu2 %241 }
 0x2e7   :  { %766 = vmatmul.msk.f32.vlgmr.msrb.gmra.mxu0 %vm174_vm3, %v242_v13  ;;  %767 = vmatmul.msk.f32.vlgmr.msrb.gmra.mxu1 %vm174_vm3, %v242_v13 }
 0x2e8   :  { %523 = vmatpush.msrb.mxu0 %v981_v17  ;;  %543 = vmatpush.msrb.mxu1 %v983_v18 }
 0x2ea   :  { %524 = vmatpush.msrb.mxu0 %v985_v19  ;;  %544 = vmatpush.msrb.mxu1 %v989_v20 }
 0x2ec   :  { %525 = vmatpush.msrb.mxu0 %v991_v21  ;;  %545 = vmatpush.msrb.mxu1 %v993_v22 }
 0x2ee   :  { %526 = vmatpush.msrb.mxu0 %v1008_v32  ;;  %546 = vmatpush.msrb.mxu1 %v1010_v33 }
 0x2f0   :  { %527 = vmatpush.msrb.mxu0 %v1019_v35  ;;  %547 = vmatpush.msrb.mxu1 %v1021_v36 }
 0x2f2   :  { %528 = vmatpush.msrb.mxu0 %v1025_v37  ;;  %548 = vmatpush.msrb.mxu1 %v1027_v38 }
 0x2f4   :  { %529 = vmatpush.msrb.mxu0 %v1032_v39  ;;  %549 = vmatpush.msrb.mxu1 %v1034_v40 }
 0x2f6   :  { %530 = vmatpush.msrb.mxu0 %v1044_v41  ;;  %550 = vmatpush.msrb.mxu1 %v1046_v42 }
 0x364   :  { %v266_v24 = vpop.f32.mrf.mxu0  ;;  %v286_v26 = vpop.f32.mrf.mxu1 }
 0x365   :  { %v267_v25 = vadd.f32 %v266_v24, %v243_v23  ;;  %v287_v29 = vadd.f32 %v286_v26, %v244_v28 }
 0x367   :  { %v289_v27 = vmul.f32 0.5, %v267_v25  ;;  %v294_v45 = vmul.f32 0.5, %v287_v29 }
 0x369   :  { %805 = vtanh.f32 %v289_v27 }
 0x36a   :  { %807 = vtanh.f32 %v287_v29 }
 0x36b   :  { %809 = vtanh.f32 %v294_v45 }
 0x36f   :  { %v806_v30 = vpop.eup %805 }
 0x370   :  { %v291_v31 = vmul.f32 0.5, %v806_v30  ;;  %v808_v43 = vpop.eup %807 }
 0x371   :  { %v810_v48 = vpop.eup %809 }
 0x372   :  { %v292_v34 = vadd.f32 0.5, %v291_v31  ;;  %v296_v51 = vmul.f32 0.5, %v810_v48 }
 0x374   :  { %v299_v44 = vmul.f32 %v808_v43, %v292_v34  ;;  %v298_v46 = vmul.f32 %v292_v34, %v237_v4  ;;  %v297_v52 = vadd.f32 0.5, %v296_v51 }
 0x376   :  { %301 = vrot.lane.b32.xlu0 %v299_v44, %s916_s1 }
 0x3e8   :  { %v302_v47 = vpop.permute.xlu0 %301 }
 0x3e9   :  { %v304_v50 = vadd.f32 %v302_v47, %v298_v46 }
 0x3eb   :  { %811 = vtanh.f32 %v304_v50 }
 0x3f1   :  { %v812_v53 = vpop.eup %811 }
 0x3f2   :  { %v306_v54 = vmul.f32 %v812_v53, %v297_v52 }
 0x3f4   :  { %308 = vrot.lane.b32.xlu1 %v306_v54, %s916_s1 }
 0x466   :  { %v309_v55 = vpop.permute.xlu1 %308 }
 0x467   :  { %768 = vmatmul.msk.f32.vlgmr.msrb.gmra.mxu2 %vm174_vm3, %v309_v55  ;;  %769 = vmatmul.msk.f32.vlgmr.msra.gmra.mxu3 %vm174_vm3, %v309_v55 }
 0x468   :  { %590 = vmatpush.msrb.mxu2 %v981_v17  ;;  %610 = vmatpush.msra.mxu3 %v983_v18 }
 0x46a   :  { %591 = vmatpush.msrb.mxu2 %v985_v19  ;;  %611 = vmatpush.msra.mxu3 %v989_v20 }
 0x46c   :  { %592 = vmatpush.msrb.mxu2 %v991_v21  ;;  %612 = vmatpush.msra.mxu3 %v993_v22 }
 0x46e   :  { %593 = vmatpush.msrb.mxu2 %v1008_v32  ;;  %613 = vmatpush.msra.mxu3 %v1010_v33 }
 0x470   :  { %594 = vmatpush.msrb.mxu2 %v1019_v35  ;;  %614 = vmatpush.msra.mxu3 %v1021_v36 }
 0x472   :  { %595 = vmatpush.msrb.mxu2 %v1025_v37  ;;  %615 = vmatpush.msra.mxu3 %v1027_v38 }
 0x474   :  { %596 = vmatpush.msrb.mxu2 %v1032_v39  ;;  %616 = vmatpush.msra.mxu3 %v1034_v40 }
 0x476   :  { %597 = vmatpush.msrb.mxu2 %v1044_v41  ;;  %617 = vmatpush.msra.mxu3 %v1046_v42 }
 0x4ea   :  { %v333_v57 = vpop.f32.mrf.mxu2  ;;  %v353_v59 = vpop.f32.mrf.mxu3 }
 0x4eb   :  { %v334_v58 = vadd.f32 %v333_v57, %v310_v56  ;;  %v354_v62 = vadd.f32 %v353_v59, %v311_v61 }
 0x4ed   :  { %v356_v60 = vmul.f32 0.5, %v334_v58  ;;  %v361_v4 = vmul.f32 0.5, %v354_v62 }
 0x4ef   :  { %813 = vtanh.f32 %v356_v60 }
 0x4f0   :  { %815 = vtanh.f32 %v354_v62 }
 0x4f1   :  { %817 = vtanh.f32 %v361_v4 }
 0x4f5   :  { %v814_v63 = vpop.eup %813 }
 0x4f6   :  { %v358_v0 = vmul.f32 0.5, %v814_v63  ;;  %v816_v2 = vpop.eup %815 }
 0x4f7   :  { %v818_v8 = vpop.eup %817 }
 0x4f8   :  { %v359_v1 = vadd.f32 0.5, %v358_v0  ;;  %v363_v12 = vmul.f32 0.5, %v818_v8 }
 0x4fa   :  { %v366_v3 = vmul.f32 %v816_v2, %v359_v1  ;;  %v365_v7 = vmul.f32 %v359_v1, %v304_v50  ;;  %v364_v13 = vadd.f32 0.5, %v363_v12 }
 0x4fc   :  { %368 = vrot.lane.b32.xlu2 %v366_v3, %s916_s1 }
 0x556   :  { %v369_v9 = vpop.permute.xlu2 %368 }
 0x557   :  { %v371_v11 = vadd.f32 %v369_v9, %v365_v7 }
 0x559   :  { %819 = vtanh.f32 %v371_v11 }
 0x55f   :  { %v820_v10 = vpop.eup %819 }
 0x560   :  { %v373_v23 = vmul.f32 %v820_v10, %v364_v13 }
 0x562   :  { %375 = vrot.lane.b32.xlu0 %v373_v23, %s916_s1 }
 0x5d4   :  { %v376_v24 = vpop.permute.xlu0 %375 }
 0x5d5   :  { %770 = vmatmul.msk.f32.vlgmr.msra.gmra.mxu0 %vm174_vm3, %v376_v24  ;;  %771 = vmatmul.msk.f32.vlgmr.msra.gmra.mxu1 %vm174_vm3, %v376_v24 }
 0x5d6   :  { %653 = vmatpush.msra.mxu0 %v981_v17  ;;  %673 = vmatpush.msra.mxu1 %v983_v18  ;;  %v1189_v17 = vadd.f32 %v1139_v15, %v968_v5 }
 0x5d8   :  { %654 = vmatpush.msra.mxu0 %v985_v19  ;;  %674 = vmatpush.msra.mxu1 %v989_v20  ;;  %v442_v29 = vrot.slane %v1189_v17, 2  ;;  %v509_v62 = vrot.slane %v1189_v17, 4 }
 0x5da   :  { %655 = vmatpush.msra.mxu0 %v991_v21  ;;  %675 = vmatpush.msra.mxu1 %v993_v22  ;;  %v1194_v21 = vadd.f32 %v1137_v14, %v970_v6 }
 0x5dc   :  { %656 = vmatpush.msra.mxu0 %v1008_v32  ;;  %676 = vmatpush.msra.mxu1 %v1010_v33  ;;  %v443_v44 = vrot.slane %v1194_v21, 2  ;;  %v510_v3 = vrot.slane %v1194_v21, 4 }
 0x5de   :  { %657 = vmatpush.msra.mxu0 %v1019_v35  ;;  %677 = vmatpush.msra.mxu1 %v1021_v36 }
 0x5e0   :  { %658 = vmatpush.msra.mxu0 %v1025_v37  ;;  %678 = vmatpush.msra.mxu1 %v1027_v38 }
 0x5e2   :  { %659 = vmatpush.msra.mxu0 %v1032_v39  ;;  %679 = vmatpush.msra.mxu1 %v1034_v40 }
 0x5e4   :  { %660 = vmatpush.msra.mxu0 %v1044_v41  ;;  %680 = vmatpush.msra.mxu1 %v1046_v42 }
 0x652   :  { %v396_v18 = vpop.f32.mrf.mxu0  ;;  %v416_v20 = vpop.f32.mrf.mxu1 }
 0x653   :  { %v397_v19 = vadd.f32 %v396_v18, %v1189_v17  ;;  %v417_v32 = vadd.f32 %v416_v20, %v1194_v21 }
 0x655   :  { %v419_v22 = vmul.f32 0.5, %v397_v19  ;;  %v424_v39 = vmul.f32 0.5, %v417_v32 }
 0x657   :  { %821 = vtanh.f32 %v419_v22 }
 0x658   :  { %823 = vtanh.f32 %v417_v32 }
 0x659   :  { %825 = vtanh.f32 %v424_v39 }
 0x65d   :  { %v822_v33 = vpop.eup %821 }
 0x65e   :  { %v421_v35 = vmul.f32 0.5, %v822_v33  ;;  %v824_v37 = vpop.eup %823 }
 0x65f   :  { %v826_v42 = vpop.eup %825 }
 0x660   :  { %v422_v36 = vadd.f32 0.5, %v421_v35  ;;  %v426_v14 = vmul.f32 0.5, %v826_v42  ;;  %v576_v35 = vrot.slane %v1189_v17, 6 }
 0x662   :  { %v429_v38 = vmul.f32 %v824_v37, %v422_v36  ;;  %v428_v40 = vmul.f32 %v422_v36, %v371_v11  ;;  %v427_v25 = vadd.f32 0.5, %v426_v14 }
 0x664   :  { %431 = vrot.lane.b32.xlu1 %v429_v38, %s916_s1 }
 0x6d6   :  { %v432_v41 = vpop.permute.xlu1 %431 }
 0x6d7   :  { %v434_v15 = vadd.f32 %v432_v41, %v428_v40  ;;  %v577_v40 = vrot.slane %v1194_v21, 6 }
 0x6d9   :  { %827 = vtanh.f32 %v434_v15 }
 0x6df   :  { %v828_v26 = vpop.eup %827 }
 0x6e0   :  { %v436_v27 = vmul.f32 %v828_v26, %v427_v25 }
 0x6e2   :  { %438 = vrot.lane.b32.xlu2 %v436_v27, %s916_s1 }
 0x73c   :  { %v439_v28 = vpop.permute.xlu2 %438 }
 0x73d   :  { %772 = vmatmul.msk.f32.vlgmr.msra.gmra.mxu2 %vm174_vm3, %v439_v28  ;;  %773 = vmatmul.msk.f32.vlgmr.msrb.gmra.mxu3 %vm174_vm3, %v439_v28 }
 0x7c0   :  { %v465_v30 = vpop.f32.mrf.mxu2  ;;  %v485_v34 = vpop.f32.mrf.mxu3 }
 0x7c1   :  { %v466_v31 = vadd.f32 %v465_v30, %v442_v29  ;;  %v486_v45 = vadd.f32 %v485_v34, %v443_v44 }
 0x7c3   :  { %v488_v43 = vmul.f32 0.5, %v466_v31  ;;  %v493_v52 = vmul.f32 0.5, %v486_v45 }
 0x7c5   :  { %829 = vtanh.f32 %v488_v43 }
 0x7c6   :  { %831 = vtanh.f32 %v486_v45  ;;  %v93_v45 = vadd.f32 %v1106_v49, %v968_v5  ;;  %v706_v5 = vld [vmem:[%s1246_s4 + $0x18] sm:$0xff]  ;;  %v705_v49 = vld [vmem:[%s1246_s4 + $0x10] sm:$0xff] }
 0x7c7   :  { %833 = vtanh.f32 %v493_v52  ;;  %729 = vmatpush.msra.mxu2 %v706_v5 }
 0x7c9   :  { %730 = vmatpush.msra.mxu2 %v705_v49 }
 0x7cb   :  { %v830_v46 = vpop.eup %829 }
 0x7cc   :  { %v490_v47 = vmul.f32 0.5, %v830_v46  ;;  %v832_v50 = vpop.eup %831 }
 0x7cd   :  { %v834_v55 = vpop.eup %833 }
 0x7ce   :  { %v491_v48 = vadd.f32 0.5, %v490_v47  ;;  %v495_v57 = vmul.f32 0.5, %v834_v55 }
 0x7d0   :  { %v498_v51 = vmul.f32 %v832_v50, %v491_v48  ;;  %v497_v53 = vmul.f32 %v491_v48, %v434_v15  ;;  %v496_v58 = vadd.f32 0.5, %v495_v57  ;;  %v119_v50 = vadd.f32 %v1141_v16, %v970_v6  ;;  %v704_v6 = vld [vmem:[%s1246_s4 + $0x8] sm:$0xff]  ;;  %v703_v16 = vld [vmem:[%s1246_s4] sm:$0xff] }
 0x7d1   :  { %731 = vmatpush.msra.mxu2 %v704_v6 }
 0x7d2   :  { %500 = vrot.lane.b32.xlu0 %v498_v51, %s916_s1 }
 0x7d3   :  { %732 = vmatpush.msra.mxu2 %v703_v16 }
 0x844   :  { %v501_v54 = vpop.permute.xlu0 %500 }
 0x845   :  { %v503_v56 = vadd.f32 %v501_v54, %v497_v53 }
 0x847   :  { %835 = vtanh.f32 %v503_v56 }
 0x84d   :  { %v836_v59 = vpop.eup %835 }
 0x84e   :  { %v505_v60 = vmul.f32 %v836_v59, %v496_v58 }
 0x850   :  { %507 = vrot.lane.b32.xlu1 %v505_v60, %s916_s1 }
 0x8c2   :  { %v508_v61 = vpop.permute.xlu1 %507 }
 0x8c3   :  { %774 = vmatmul.msk.f32.vlgmr.msrb.gmra.mxu0 %vm174_vm3, %v508_v61  ;;  %775 = vmatmul.msk.f32.vlgmr.msrb.gmra.mxu1 %vm174_vm3, %v508_v61 }
 0x940   :  { %v532_v63 = vpop.f32.mrf.mxu0  ;;  %v552_v1 = vpop.f32.mrf.mxu1 }
 0x941   :  { %v533_v0 = vadd.f32 %v532_v63, %v509_v62  ;;  %v553_v4 = vadd.f32 %v552_v1, %v510_v3 }
 0x943   :  { %v555_v2 = vmul.f32 0.5, %v533_v0  ;;  %v560_v13 = vmul.f32 0.5, %v553_v4 }
 0x945   :  { %837 = vtanh.f32 %v555_v2 }
 0x946   :  { %839 = vtanh.f32 %v553_v4  ;;  %v788_v4 = vld [vmem:[%s1247_s5] ss:$0 sm:$0xff] }
 0x947   :  { %841 = vtanh.f32 %v560_v13 }
 0x94b   :  { %v838_v7 = vpop.eup %837 }
 0x94c   :  { %v557_v9 = vmul.f32 0.5, %v838_v7  ;;  %v840_v11 = vpop.eup %839 }
 0x94d   :  { %v842_v24 = vpop.eup %841 }
 0x94e   :  { %v558_v8 = vadd.f32 0.5, %v557_v9  ;;  %v562_v19 = vmul.f32 0.5, %v842_v24 }
 0x950   :  { %v565_v12 = vmul.f32 %v840_v11, %v558_v8  ;;  %v564_v10 = vmul.f32 %v558_v8, %v503_v56  ;;  %v563_v20 = vadd.f32 0.5, %v562_v19 }
 0x952   :  { %567 = vrot.lane.b32.xlu2 %v565_v12, %s916_s1 }
 0x9ac   :  { %v568_v23 = vpop.permute.xlu2 %567 }
 0x9ad   :  { %v570_v18 = vadd.f32 %v568_v23, %v564_v10 }
 0x9af   :  { %843 = vtanh.f32 %v570_v18 }
 0x9b5   :  { %v844_v22 = vpop.eup %843 }
 0x9b6   :  { %v572_v32 = vmul.f32 %v844_v22, %v563_v20 }
 0x9b8   :  { %574 = vrot.lane.b32.xlu0 %v572_v32, %s916_s1 }
 0xa2a   :  { %v575_v33 = vpop.permute.xlu0 %574 }
 0xa2b   :  { %776 = vmatmul.msk.f32.vlgmr.msrb.gmra.mxu2 %vm174_vm3, %v575_v33  ;;  %777 = vmatmul.msk.f32.vlgmr.msra.gmra.mxu3 %vm174_vm3, %v575_v33 }
 0xaae   :  { %v599_v36 = vpop.f32.mrf.mxu2  ;;  %v619_v38 = vpop.f32.mrf.mxu3 }
 0xaaf   :  { %v600_v37 = vadd.f32 %v599_v36, %v576_v35  ;;  %v620_v41 = vadd.f32 %v619_v38, %v577_v40 }
 0xab1   :  { %v622_v39 = vmul.f32 0.5, %v600_v37  ;;  %v627_v27 = vmul.f32 0.5, %v620_v41 }
 0xab3   :  { %845 = vtanh.f32 %v622_v39 }
 0xab4   :  { %847 = vtanh.f32 %v620_v41 }
 0xab5   :  { %849 = vtanh.f32 %v627_v27 }
 0xab9   :  { %v846_v42 = vpop.eup %845 }
 0xaba   :  { %v624_v15 = vmul.f32 0.5, %v846_v42  ;;  %v848_v25 = vpop.eup %847 }
 0xabb   :  { %v850_v29 = vpop.eup %849 }
 0xabc   :  { %v625_v14 = vadd.f32 0.5, %v624_v15  ;;  %v629_v31 = vmul.f32 0.5, %v850_v29 }
 0xabe   :  { %v632_v26 = vmul.f32 %v848_v25, %v625_v14  ;;  %v631_v28 = vmul.f32 %v625_v14, %v570_v18  ;;  %v630_v34 = vadd.f32 0.5, %v629_v31 }
 0xac0   :  { %634 = vrot.lane.b32.xlu1 %v632_v26, %s916_s1 }
 0xb32   :  { %v635_v17 = vpop.permute.xlu1 %634 }
 0xb33   :  { %v637_v30 = vadd.f32 %v635_v17, %v631_v28 }
 0xb35   :  { %851 = vtanh.f32 %v637_v30 }
 0xb3b   :  { %v852_v21 = vpop.eup %851 }
 0xb3c   :  { %v639_v43 = vmul.f32 %v852_v21, %v630_v34 }
 0xb3e   :  { %641 = vrot.lane.b32.xlu2 %v639_v43, %s916_s1 }
 0xb98   :  { %v642_v44 = vpop.permute.xlu2 %641 }
 0xb99   :  { %778 = vmatmul.msk.f32.vlgmr.msra.gmra.mxu0 %vm174_vm3, %v642_v44  ;;  %779 = vmatmul.msk.f32.vlgmr.msra.gmra.mxu1 %vm174_vm3, %v642_v44 }
 0xc16   :  { %v662_v46 = vpop.f32.mrf.mxu0  ;;  %v682_v48 = vpop.f32.mrf.mxu1 }
 0xc17   :  { %v663_v47 = vadd.f32 %v662_v46, %v93_v45  ;;  %v683_v52 = vadd.f32 %v682_v48, %v119_v50 }
 0xc19   :  { %v685_v51 = vmul.f32 0.5, %v663_v47  ;;  %v690_v58 = vmul.f32 0.5, %v683_v52 }
 0xc1b   :  { %853 = vtanh.f32 %v685_v51 }
 0xc1c   :  { %855 = vtanh.f32 %v683_v52 }
 0xc1d   :  { %857 = vtanh.f32 %v690_v58 }
 0xc21   :  { %v854_v53 = vpop.eup %853 }
 0xc22   :  { %v687_v54 = vmul.f32 0.5, %v854_v53  ;;  %v856_v56 = vpop.eup %855 }
 0xc23   :  { %v858_v61 = vpop.eup %857 }
 0xc24   :  { %v688_v55 = vadd.f32 0.5, %v687_v54  ;;  %v692_v63 = vmul.f32 0.5, %v858_v61 }
 0xc26   :  { %v695_v57 = vmul.f32 %v856_v56, %v688_v55  ;;  %v694_v59 = vmul.f32 %v688_v55, %v637_v30  ;;  %v693_v0 = vadd.f32 0.5, %v692_v63 }
 0xc28   :  { %697 = vrot.lane.b32.xlu0 %v695_v57, %s916_s1 }
 0xc9a   :  { %v698_v60 = vpop.permute.xlu0 %697 }
 0xc9b   :  { %v700_v62 = vadd.f32 %v698_v60, %v694_v59 }
 0xc9d   :  { %859 = vtanh.f32 %v700_v62 }
 0xca3   :  { %v860_v1 = vpop.eup %859 }
 0xca4   :  { %v702_v2 = vmul.f32 %v860_v1, %v693_v0 }
 0xca6   :  { %712 = vrot.lane.b32.xlu1 %v702_v2, %s917_s19 }
 0xd18   :  { %v713_v3 = vpop.permute.xlu1 %712 }
 0xd19   :  { %780 = vmatmul.msk.f32.vlgmr.msra.gmra.mxu2 %vm714_vm4, %v713_v3 }
 0xd9c   :  { %v734_v7 = vpop.f32.mrf.mxu2 }
 0xd9d   :  { %v735_v9 = vadd.f32 %v788_v4, %v734_v7 }
 0xd9f   :  { %738 = vst.msk [vmem:[#allocation5] sm:$0x3] %vm737_vm5, %v735_v9 }
 0xda0   :  { %749 = dma.vmem_to_hbm [thread:$0]  %s745_s22, 32, %s747_s25, [#allocation4]  }
 0xda1   :  { %911 = dma.done.wait [#allocation4], 32  }
 0xda2   :  { %912 = vsyncadd [#allocation4], 4294967264 }
 0xda3   :  { %754 = vsyncpa [#allocation3], 1 }
 0xda4   :  { %755 = vsyncpa [#allocation4], 1 }

</bundles_post_ra>
